<compile_context>
chip_gen: v5e
topology: v5e:2x2
jax: 0.10.0
libtpu: 0.0.40
codegen_flags: <defaults>
</compile_context>

<pallas_src>
import functools

import jax
import jax.numpy as jnp
from jax.experimental import pallas as pl
from jax.experimental.pallas import tpu as pltpu


def _noactq_dma_kernel(x_hbm, o_hbm, copy_sems, *, chunk_bounds):
    """Pure HBM->HBM copy: no VMEM staging, no vector loads/stores."""
    if chunk_bounds is None:
        # 0-d input: single whole-buffer DMA.
        cp = pltpu.make_async_copy(x_hbm, o_hbm, copy_sems.at[0])
        cp.start()
        cp.wait()
        return

    copies = []
    for idx, (start, size) in enumerate(chunk_bounds):  # static Python loop
        copies.append(
            pltpu.make_async_copy(
                x_hbm.at[pl.ds(start, size)],
                o_hbm.at[pl.ds(start, size)],
                copy_sems.at[idx],
            )
        )
    # Issue every chunk first (multiple DMAs in flight), then wait on all.
    for cp in copies:
        cp.start()
    for cp in copies:
        cp.wait()


def _chunk_leading_dim(shape, itemsize):
    """Static chunk plan over the leading dim; None for 0-d inputs."""
    if len(shape) == 0:
        return None
    lead = shape[0]
    total_bytes = itemsize
    for d in shape:
        total_bytes *= d
    if lead <= 1 or total_bytes < (1 << 20):
        n_chunks = 1                      # tiny tensor: one DMA, no per-chunk overhead
    elif total_bytes < (8 << 20):
        n_chunks = min(2, lead)
    else:
        n_chunks = min(8, lead)           # several concurrent DMA transactions
    base, rem = divmod(lead, n_chunks)
    bounds, start = [], 0
    for i in range(n_chunks):
        size = base + (1 if i < rem else 0)
        if size > 0:
            bounds.append((start, size))
        start += size
    return tuple(bounds)


def no_act_q(x: jax.Array, nbits_a: int = 4) -> jax.Array:
    """Pallas implementation of NoActQ.forward (identity). `nbits_a` is unused,
    matching the PyTorch module which never touches it in forward.

    NOTE: in a real model this op should simply be `return x` (zero cost). The
    pallas_call below is the cheapest kernel form: one read + one write of the
    tensor at the HBM-bandwidth roofline, driven entirely by the DMA engine.
    """
    del nbits_a  # TODO(synk): base-class __init__ only stores nbits; it never affects forward.
    chunk_bounds = _chunk_leading_dim(x.shape, x.dtype.itemsize)
    n_sems = 1 if chunk_bounds is None else max(1, len(chunk_bounds))

    return pl.pallas_call(
        functools.partial(_noactq_dma_kernel, chunk_bounds=chunk_bounds),
        out_shape=jax.ShapeDtypeStruct(x.shape, x.dtype),
        in_specs=[pl.BlockSpec(memory_space=pl.ANY)],   # keep input in HBM, no auto-DMA
        out_specs=pl.BlockSpec(memory_space=pl.ANY),    # output stays in HBM too
        scratch_shapes=[pltpu.SemaphoreType.DMA((n_sems,))],
    )(x)


if __name__ == "__main__":
    key = jax.random.PRNGKey(0)
    # NCHW input, small shapes (batch=2, channels=4, spatial=16x16)
    x = jax.random.normal(key, (2, 4, 16, 16), dtype=jnp.float32)

    y = no_act_q(x, nbits_a=4)
    jax.block_until_ready(y)

    # Verify identity semantics exactly.
    assert y.shape == x.shape
    assert y.dtype == x.dtype
    assert bool(jnp.all(y == x))

    print("KERNEL_OK")
</pallas_src>

<mosaic_0001>
module attributes {stable_mosaic.version = 11 : i64} {
  func.func @_noactq_dma_kernel(%arg0: memref<2x4x16x16xf32, #tpu.memory_space<any>>, %arg1: memref<2x4x16x16xf32, #tpu.memory_space<any>>, %arg2: memref<1x!tpu.dma_semaphore, #tpu.memory_space<semaphore_mem>>) attributes {dimension_semantics = [], scalar_prefetch = 0 : i64, scratch_operands = 1 : i64, tpu.core_type = #tpu.core_type<tc>} {
    %c0_i32 = arith.constant 0 : i32
    %c0_i32_0 = arith.constant 0 : i32
    %c0_i32_1 = arith.constant 0 : i32
    %c0_i32_2 = arith.constant 0 : i32
    %c0_i32_3 = arith.constant 0 : i32
    %0 = tpu.memref_slice %arg0[%c0_i32_0, %c0_i32_1, %c0_i32_2, %c0_i32_3] : memref<2x4x16x16xf32, #tpu.memory_space<any>> -> memref<2x4x16x16xf32, #tpu.memory_space<any>>
    %c0_i32_4 = arith.constant 0 : i32
    %c0_i32_5 = arith.constant 0 : i32
    %c0_i32_6 = arith.constant 0 : i32
    %c0_i32_7 = arith.constant 0 : i32
    %1 = tpu.memref_slice %arg1[%c0_i32_4, %c0_i32_5, %c0_i32_6, %c0_i32_7] : memref<2x4x16x16xf32, #tpu.memory_space<any>> -> memref<2x4x16x16xf32, #tpu.memory_space<any>>
    %2 = tpu.memref_slice %arg2[%c0_i32] : memref<1x!tpu.dma_semaphore, #tpu.memory_space<semaphore_mem>> -> memref<1x!tpu.dma_semaphore, #tpu.memory_space<semaphore_mem>>
    %3 = tpu.memref_squeeze %2 : memref<1x!tpu.dma_semaphore, #tpu.memory_space<semaphore_mem>> -> memref<!tpu.dma_semaphore, #tpu.memory_space<semaphore_mem>>
    tpu.enqueue_dma source(%0 : memref<2x4x16x16xf32, #tpu.memory_space<any>>) target(%1 : memref<2x4x16x16xf32, #tpu.memory_space<any>>) target_semaphore(%3 : memref<!tpu.dma_semaphore, #tpu.memory_space<semaphore_mem>>)
    %c0_i32_8 = arith.constant 0 : i32
    %c0_i32_9 = arith.constant 0 : i32
    %c0_i32_10 = arith.constant 0 : i32
    %c0_i32_11 = arith.constant 0 : i32
    %c0_i32_12 = arith.constant 0 : i32
    %4 = tpu.memref_slice %arg0[%c0_i32_9, %c0_i32_10, %c0_i32_11, %c0_i32_12] : memref<2x4x16x16xf32, #tpu.memory_space<any>> -> memref<2x4x16x16xf32, #tpu.memory_space<any>>
    %c0_i32_13 = arith.constant 0 : i32
    %c0_i32_14 = arith.constant 0 : i32
    %c0_i32_15 = arith.constant 0 : i32
    %c0_i32_16 = arith.constant 0 : i32
    %5 = tpu.memref_slice %arg1[%c0_i32_13, %c0_i32_14, %c0_i32_15, %c0_i32_16] : memref<2x4x16x16xf32, #tpu.memory_space<any>> -> memref<2x4x16x16xf32, #tpu.memory_space<any>>
    %6 = tpu.memref_slice %arg2[%c0_i32_8] : memref<1x!tpu.dma_semaphore, #tpu.memory_space<semaphore_mem>> -> memref<1x!tpu.dma_semaphore, #tpu.memory_space<semaphore_mem>>
    %7 = tpu.memref_squeeze %6 : memref<1x!tpu.dma_semaphore, #tpu.memory_space<semaphore_mem>> -> memref<!tpu.dma_semaphore, #tpu.memory_space<semaphore_mem>>
    tpu.wait_dma2 semaphore(%7 : memref<!tpu.dma_semaphore, #tpu.memory_space<semaphore_mem>>) src(%4 : memref<2x4x16x16xf32, #tpu.memory_space<any>>) dst(%5 : memref<2x4x16x16xf32, #tpu.memory_space<any>>)
    return
  }
}

</mosaic_0001>

<bundles_post_ra>
// kernel: tpu_custom_call.1
= control target key start
LH: loop header
LB: loop body
LE: loop exit
PB: predicated region body
PF: predicated region fallthrough
CT: control target
= control target key end

     0   :  { %s34_s12 = smov [#allocation2]   ;;  %s35_s13 = smov [#allocation3]   ;;  %s53_s0 = inlined_call_operand.hbm [shape: f32[2,4,16,16], index: 0, kind: input, shape index: {}]   ;;  %s54_s1 = inlined_call_operand.hbm [shape: f32[2,4,16,16], index: 1, kind: output, shape index: {}]  }
   0x1   :  { %s10_s8 = sshll.u32 %s53_s0, 4  ;;  %s12_s11 = sshll.u32 %s54_s1, 4  ;;  %s11_s8 = int_to_ptr.hbm [resolvable:$true] %s10_s8  ;;  %s13_s11 = int_to_ptr.hbm [resolvable:$true] %s12_s11 }
   0x2   :  { %s36_s14 = smov 0  }
   0x3   :  { %16 = dma.general %s11_s8, 2048, %s13_s11, %s34_s12, %s35_s13, [#allocation4], %s36_s14, 0  }
   0x4   :  { %32 = dma.done.wait [#allocation2], 2048 }
   0x5   :  { %33 = vsyncadd [#allocation2], 4294965248 }
   0x6   :  { %22 = vsyncmov [#allocation2] }
   0x9   :  { %s23_s15 = vpop.sfrf %22 }
   0xa   :  { %p28_p0 = scmp.ne.s32.totalorder %s23_s15, 0 }
   0xc   :  { %27 = shalt.err (%p28_p0)  }

</bundles_post_ra>
